<compile_context>
chip_gen: v7x
topology: tpu7x:2x2x1
jax: 0.10.0
libtpu: 0.0.40
codegen_flags: <defaults>
</compile_context>

<pallas_src>
import functools

import jax
import jax.numpy as jnp
from jax import lax
from jax.experimental import pallas as pl
from jax.experimental.pallas import tpu as pltpu


LANE = 128  # pad all feature dims to multiples of 128 lanes (dense vst, full MXU tile)


def _round_up(x, m):
    return (x + m - 1) // m * m


def _pad2d(a, shape):
    out = jnp.zeros(shape, a.dtype)
    return out.at[: a.shape[0], : a.shape[1]].set(a)


# ----------------------------------------------------------------------------
# Pallas kernels
# ----------------------------------------------------------------------------
def sage_layer_kernel(a_ref, inv_deg_ref, x_ref, w_ref, b_ref, o_ref, *, block_rows):
    """One GraphSage layer on a tile of node rows.

    aggr = (A_tile @ X) * inv_deg_tile                       # mean aggregation (bf16 MXU)
    h    = relu(cat([x_tile, aggr], -1) @ W_cat + b)         # single merged matmul
    out  = h * rsqrt(max(sum(h^2), eps^2))                   # F.normalize(p=2, dim=1)
    """
    i = pl.program_id(0)
    row0 = pl.multiple_of(i * block_rows, block_rows)

    # Mean aggregation of neighbor features (dominant O(N^2) op) in bf16.
    aggr = jnp.dot(a_ref[...], x_ref[...], preferred_element_type=jnp.float32)
    aggr = aggr * inv_deg_ref[...]                       # fold 1/deg scale into kernel

    # Rows of X belonging to this tile (X is VMEM-resident; slice, no extra DMA).
    x_tile = x_ref[pl.ds(row0, block_rows), :].astype(jnp.float32)

    # agg_lin(cat([x, aggr], dim=1)): one MXU matmul with stacked weights.
    cat = jnp.concatenate([x_tile, aggr], axis=-1)
    h = jnp.dot(cat, w_ref[...], preferred_element_type=jnp.float32) + b_ref[...]
    h = jnp.maximum(h, 0.0)                              # F.relu (update); outer relu no-op

    # F.normalize(p=2, dim=1) via rsqrt on the EUP (eps = 1e-12 on the norm).
    sumsq = jnp.sum(h * h, axis=1, keepdims=True)
    inv_norm = lax.rsqrt(jnp.maximum(sumsq, 1e-24))
    o_ref[...] = (h * inv_norm).astype(o_ref.dtype)


def sage_post_kernel(a_ref, inv_deg_ref, x_ref, w_ref, b_ref,
                     w1_ref, b1_ref, w2_ref, b2_ref, o_ref,
                     *, block_rows, num_classes):
    """Last GraphSage layer fused with post_mp (Linear->Dropout(id)->Linear) + log_softmax."""
    i = pl.program_id(0)
    row0 = pl.multiple_of(i * block_rows, block_rows)

    aggr = jnp.dot(a_ref[...], x_ref[...], preferred_element_type=jnp.float32)
    aggr = aggr * inv_deg_ref[...]
    x_tile = x_ref[pl.ds(row0, block_rows), :].astype(jnp.float32)

    cat = jnp.concatenate([x_tile, aggr], axis=-1)
    h = jnp.dot(cat, w_ref[...], preferred_element_type=jnp.float32) + b_ref[...]
    h = jnp.maximum(h, 0.0)
    inv_norm = lax.rsqrt(jnp.maximum(jnp.sum(h * h, axis=1, keepdims=True), 1e-24))
    h = h * inv_norm

    # post_mp: Linear(hidden, hidden) -> Dropout(identity) -> Linear(hidden, output)
    z = jnp.dot(h, w1_ref[...], preferred_element_type=jnp.float32) + b1_ref[...]
    z = jnp.dot(z, w2_ref[...], preferred_element_type=jnp.float32) + b2_ref[...]

    # log_softmax over the real class columns only (padded lanes masked out).
    col = lax.broadcasted_iota(jnp.int32, z.shape, 1)
    z = jnp.where(col < num_classes, z, -1e30)
    m = jnp.max(z, axis=1, keepdims=True)
    lse = m + jnp.log(jnp.sum(jnp.exp(z - m), axis=1, keepdims=True))
    o_ref[...] = z - lse


# ----------------------------------------------------------------------------
# pallas_call wrappers (row-tiled grid, weights resident)
# ----------------------------------------------------------------------------
def sage_layer(a_bf16, inv_deg, x_bf16, w_cat, b, *, block_rows):
    n_pad, d_in_pad = x_bf16.shape
    d_out_pad = w_cat.shape[1]
    grid = (n_pad // block_rows,)
    return pl.pallas_call(
        functools.partial(sage_layer_kernel, block_rows=block_rows),
        out_shape=jax.ShapeDtypeStruct((n_pad, d_out_pad), jnp.bfloat16),
        grid_spec=pltpu.PrefetchScalarGridSpec(
            num_scalar_prefetch=0,
            grid=grid,
            in_specs=[
                pl.BlockSpec((block_rows, n_pad), lambda i: (i, 0)),   # A row tile
                pl.BlockSpec((block_rows, 1), lambda i: (i, 0)),       # 1/deg row tile
                pl.BlockSpec((n_pad, d_in_pad), lambda i: (0, 0)),     # X resident
                pl.BlockSpec(w_cat.shape, lambda i: (0, 0)),           # W_cat resident
                pl.BlockSpec(b.shape, lambda i: (0, 0)),               # bias resident
            ],
            out_specs=pl.BlockSpec((block_rows, d_out_pad), lambda i: (i, 0)),
        ),
        compiler_params=pltpu.CompilerParams(dimension_semantics=("parallel",)),
    )(a_bf16, inv_deg, x_bf16, w_cat, b)


def sage_post_mp(a_bf16, inv_deg, x_bf16, w_cat, b, w1, b1, w2, b2,
                 *, num_classes, block_rows):
    n_pad, d_in_pad = x_bf16.shape
    out_pad = w2.shape[1]
    grid = (n_pad // block_rows,)
    return pl.pallas_call(
        functools.partial(sage_post_kernel, block_rows=block_rows,
                          num_classes=num_classes),
        out_shape=jax.ShapeDtypeStruct((n_pad, out_pad), jnp.float32),
        grid_spec=pltpu.PrefetchScalarGridSpec(
            num_scalar_prefetch=0,
            grid=grid,
            in_specs=[
                pl.BlockSpec((block_rows, n_pad), lambda i: (i, 0)),
                pl.BlockSpec((block_rows, 1), lambda i: (i, 0)),
                pl.BlockSpec((n_pad, d_in_pad), lambda i: (0, 0)),
                pl.BlockSpec(w_cat.shape, lambda i: (0, 0)),
                pl.BlockSpec(b.shape, lambda i: (0, 0)),
                pl.BlockSpec(w1.shape, lambda i: (0, 0)),
                pl.BlockSpec(b1.shape, lambda i: (0, 0)),
                pl.BlockSpec(w2.shape, lambda i: (0, 0)),
                pl.BlockSpec(b2.shape, lambda i: (0, 0)),
            ],
            out_specs=pl.BlockSpec((block_rows, out_pad), lambda i: (i, 0)),
        ),
        compiler_params=pltpu.CompilerParams(dimension_semantics=("parallel",)),
    )(a_bf16, inv_deg, x_bf16, w_cat, b, w1, b1, w2, b2)


# ----------------------------------------------------------------------------
# Graph preprocessing (hoisted; cache when edge_index is static)
# ----------------------------------------------------------------------------
def preprocess_graph(edge_index, num_nodes, n_pad):
    """Edge counts A[i,j] = #(edges j->i) with self-loops removed (bf16) and 1/in_degree (f32)."""
    src, dst = edge_index[0], edge_index[1]
    valid = (src != dst).astype(jnp.float32)                      # remove_self_loops
    a = jnp.zeros((n_pad, n_pad), jnp.float32).at[dst, src].add(valid)
    deg = jnp.sum(a, axis=1, keepdims=True)
    inv_deg = jnp.where(deg > 0.0, 1.0 / deg, 0.0)                # isolated nodes -> 0
    return a.astype(jnp.bfloat16), inv_deg
# TODO(synk): for genuinely large sparse graphs, replace the dense bf16 A@X with a
#             scalar-prefetch neighbor-list gather (PrefetchScalarGridSpec) to get O(E*d).


# ----------------------------------------------------------------------------
# Parameters (raw + lane-padded) and full forward
# ----------------------------------------------------------------------------
def init_raw_params(key, input_dim, hidden_dim, output_dim, num_layers):
    layers = []
    dims = [input_dim] + [hidden_dim] * num_layers
    for l in range(num_layers):
        d_in, d_out = dims[l], dims[l + 1]
        key, k1, k2 = jax.random.split(key, 3)
        # GraphSage.agg_lin: Linear(2*d_in, d_out), stored transposed (2*d_in, d_out)
        w = jax.random.normal(k1, (2 * d_in, d_out), jnp.float32) * 0.1
        b = jax.random.normal(k2, (1, d_out), jnp.float32) * 0.1
        layers.append((w, b))
    key, k1, k2, k3, k4 = jax.random.split(key, 5)
    return dict(
        layers=layers,
        w1=jax.random.normal(k1, (hidden_dim, hidden_dim), jnp.float32) * 0.1,
        b1=jax.random.normal(k2, (1, hidden_dim), jnp.float32) * 0.1,
        w2=jax.random.normal(k3, (hidden_dim, output_dim), jnp.float32) * 0.1,
        b2=jax.random.normal(k4, (1, output_dim), jnp.float32) * 0.1,
    )


def pad_params(raw, input_dim, hidden_dim, output_dim):
    d_in_pad = _round_up(input_dim, LANE)
    hid_pad = _round_up(hidden_dim, LANE)
    out_pad = _round_up(output_dim, LANE)
    num_layers = len(raw["layers"])
    d_ins = [input_dim] + [hidden_dim] * (num_layers - 1)
    d_in_pads = [d_in_pad] + [hid_pad] * (num_layers - 1)
    layers = []
    for (w, b), d_in, d_ip in zip(raw["layers"], d_ins, d_in_pads):
        w_pad = jnp.zeros((2 * d_ip, hid_pad), jnp.float32)
        w_pad = w_pad.at[:d_in, :hidden_dim].set(w[:d_in])            # W_x rows
        w_pad = w_pad.at[d_ip:d_ip + d_in, :hidden_dim].set(w[d_in:]) # W_aggr rows
        layers.append(dict(w_cat=w_pad, b=_pad2d(b, (1, hid_pad))))
    return dict(
        layers=layers,
        w1=_pad2d(raw["w1"], (hid_pad, hid_pad)),
        b1=_pad2d(raw["b1"], (1, hid_pad)),
        w2=_pad2d(raw["w2"], (hid_pad, out_pad)),
        b2=_pad2d(raw["b2"], (1, out_pad)),
        d_in_pad=d_in_pad, hid_pad=hid_pad, out_pad=out_pad,
        input_dim=input_dim, hidden_dim=hidden_dim, output_dim=output_dim,
    )


def gnn_stack_forward(params, x, a_bf16, inv_deg, *, block_rows):
    """task='node', inference (dropout = identity)."""
    n, d_in = x.shape
    n_pad = a_bf16.shape[0]
    assert block_rows % 16 == 0 and n_pad % block_rows == 0

    h = _pad2d(x, (n_pad, params["d_in_pad"])).astype(jnp.bfloat16)
    layers = params["layers"]
    for layer in layers[:-1]:
        h = sage_layer(a_bf16, inv_deg, h, layer["w_cat"], layer["b"],
                       block_rows=block_rows)
    last = layers[-1]
    out = sage_post_mp(a_bf16, inv_deg, h, last["w_cat"], last["b"],
                       params["w1"], params["b1"], params["w2"], params["b2"],
                       num_classes=params["output_dim"], block_rows=block_rows)
    return out[:n, :params["output_dim"]]
# TODO(synk): 'graph' task branch (global_max_pool over batch) not implemented;
#             only the 'node' task path is exercised here.


# ----------------------------------------------------------------------------
# Pure-JAX f32 reference (mirrors the PyTorch forward) for validation
# ----------------------------------------------------------------------------
def reference_forward(raw, x, edge_index):
    n = x.shape[0]
    src, dst = edge_index[0], edge_index[1]
    valid = (src != dst).astype(jnp.float32)
    a = jnp.zeros((n, n), jnp.float32).at[dst, src].add(valid)
    a_mean = a / jnp.maximum(jnp.sum(a, axis=1, keepdims=True), 1.0)
    h = x
    for (w, b) in raw["layers"]:
        aggr = a_mean @ h
        hh = jnp.concatenate([h, aggr], axis=-1) @ w + b
        hh = jnp.maximum(hh, 0.0)
        norm = jnp.maximum(jnp.sqrt(jnp.sum(hh * hh, axis=1, keepdims=True)), 1e-12)
        h = hh / norm
    z = h @ raw["w1"] + raw["b1"]
    z = z @ raw["w2"] + raw["b2"]
    return jax.nn.log_softmax(z, axis=1)


if __name__ == "__main__":
    N, E = 32, 96
    INPUT_DIM, HIDDEN_DIM, OUTPUT_DIM, NUM_LAYERS = 8, 32, 4, 2
    BLOCK_ROWS = 16                                   # grid = (2,) per layer

    key = jax.random.PRNGKey(0)
    kx, ksrc, kdst, kparams = jax.random.split(key, 4)

    x = jax.random.normal(kx, (N, INPUT_DIM), jnp.float32)
    src = jax.random.randint(ksrc, (E,), 0, N, jnp.int32)
    dst = jax.random.randint(kdst, (E,), 0, N, jnp.int32)
    edge_index = jnp.stack([src, dst], axis=0)        # [2, E]

    raw_params = init_raw_params(kparams, INPUT_DIM, HIDDEN_DIM, OUTPUT_DIM, NUM_LAYERS)
    params = pad_params(raw_params, INPUT_DIM, HIDDEN_DIM, OUTPUT_DIM)

    n_pad = _round_up(N, BLOCK_ROWS)
    a_bf16, inv_deg = preprocess_graph(edge_index, N, n_pad)   # hoisted / cacheable

    out = gnn_stack_forward(params, x, a_bf16, inv_deg, block_rows=BLOCK_ROWS)
    jax.block_until_ready(out)

    assert out.shape == (N, OUTPUT_DIM)
    assert bool(jnp.all(jnp.isfinite(out)))
    # rows of log_softmax must exponentiate-sum to 1
    assert jnp.allclose(jnp.sum(jnp.exp(out), axis=1), 1.0, atol=1e-4)
    # match pure-JAX f32 reference (bf16 aggregation drift tolerated)
    ref = reference_forward(raw_params, x, edge_index)
    assert jnp.allclose(out, ref, atol=5e-2), float(jnp.max(jnp.abs(out - ref)))
    print("KERNEL_OK")
</pallas_src>

<mosaic_0001>
module attributes {stable_mosaic.version = 11 : i64} {
  func.func @sage_layer_kernel(%arg0: i32, %arg1: memref<16x32xbf16, #tpu.memory_space<vmem>>, %arg2: memref<16x1xf32, #tpu.memory_space<vmem>>, %arg3: memref<32x128xbf16, #tpu.memory_space<vmem>>, %arg4: memref<256x128xf32, #tpu.memory_space<vmem>>, %arg5: memref<1x128xf32, #tpu.memory_space<vmem>>, %arg6: memref<16x128xbf16, #tpu.memory_space<vmem>>) attributes {dimension_semantics = [#tpu.dimension_semantics<parallel>], iteration_bounds = array<i64: 2>, scalar_prefetch = 0 : i64, scratch_operands = 0 : i64, tpu.core_type = #tpu.core_type<tc>, window_params = [{transform_indices = @transform_0, window_bounds = array<i64: 16, 32>}, {transform_indices = @transform_1, window_bounds = array<i64: 16, 1>}, {pipeline_mode = #tpu.pipeline_mode<synchronous>, transform_indices = @transform_2, window_bounds = array<i64: 32, 128>}, {pipeline_mode = #tpu.pipeline_mode<synchronous>, transform_indices = @transform_3, window_bounds = array<i64: 256, 128>}, {pipeline_mode = #tpu.pipeline_mode<synchronous>, transform_indices = @transform_4, window_bounds = array<i64: 1, 128>}, {transform_indices = @transform_5, window_bounds = array<i64: 16, 128>}]} {
    %c16_i32 = arith.constant 16 : i32
    %0 = arith.muli %arg0, %c16_i32 : i32
    %1 = tpu.assume_multiple %0, 16 : i32
    %c0 = arith.constant 0 : index
    %c0_0 = arith.constant 0 : index
    %2 = vector.load %arg1[%c0, %c0_0] : memref<16x32xbf16, #tpu.memory_space<vmem>>, vector<16x32xbf16>
    %c0_1 = arith.constant 0 : index
    %c0_2 = arith.constant 0 : index
    %3 = vector.load %arg3[%c0_1, %c0_2] : memref<32x128xbf16, #tpu.memory_space<vmem>>, vector<32x128xbf16>
    %cst = arith.constant dense<0.000000e+00> : vector<16x128xf32>
    %4 = tpu.matmul %2, %3, %cst {dimension_numbers = #tpu.dot_dimension_numbers<[1], [0], [0], [1], [0, 0, 1, 1], [], []>} : vector<16x32xbf16>, vector<32x128xbf16>, vector<16x128xf32> -> vector<16x128xf32>
    %c0_3 = arith.constant 0 : index
    %c0_4 = arith.constant 0 : index
    %5 = vector.load %arg2[%c0_3, %c0_4] : memref<16x1xf32, #tpu.memory_space<vmem>>, vector<16x1xf32>
    %6 = vector.broadcast %5 : vector<16x1xf32> to vector<16x128xf32>
    %7 = arith.mulf %4, %6 : vector<16x128xf32>
    %8 = arith.index_cast %1 : i32 to index
    %c0_5 = arith.constant 0 : index
    %9 = vector.load %arg3[%8, %c0_5] : memref<32x128xbf16, #tpu.memory_space<vmem>>, vector<16x128xbf16>
    %10 = arith.extf %9 : vector<16x128xbf16> to vector<16x128xf32>
    %11 = tpu.concatenate %10, %7 in 1 : vector<16x128xf32>, vector<16x128xf32> -> vector<16x256xf32>
    %c0_6 = arith.constant 0 : index
    %c0_7 = arith.constant 0 : index
    %12 = vector.load %arg4[%c0_6, %c0_7] : memref<256x128xf32, #tpu.memory_space<vmem>>, vector<256x128xf32>
    %cst_8 = arith.constant dense<0.000000e+00> : vector<16x128xf32>
    %13 = tpu.matmul %11, %12, %cst_8 {dimension_numbers = #tpu.dot_dimension_numbers<[1], [0], [0], [1], [0, 0, 1, 1], [], []>} : vector<16x256xf32>, vector<256x128xf32>, vector<16x128xf32> -> vector<16x128xf32>
    %c0_9 = arith.constant 0 : index
    %c0_10 = arith.constant 0 : index
    %14 = vector.load %arg5[%c0_9, %c0_10] : memref<1x128xf32, #tpu.memory_space<vmem>>, vector<1x128xf32>
    %15 = vector.broadcast %14 : vector<1x128xf32> to vector<16x128xf32>
    %16 = arith.addf %13, %15 : vector<16x128xf32>
    %cst_11 = arith.constant 0.000000e+00 : f32
    %17 = vector.broadcast %cst_11 : f32 to vector<16x128xf32>
    %18 = arith.maximumf %16, %17 : vector<16x128xf32>
    %19 = arith.mulf %18, %18 : vector<16x128xf32>
    %cst_12 = arith.constant dense<0.000000e+00> : vector<16xf32>
    %20 = vector.multi_reduction <add>, %19, %cst_12 [1] : vector<16x128xf32> to vector<16xf32>
    %21 = vector.shape_cast %20 : vector<16xf32> to vector<16x1xf32>
    %cst_13 = arith.constant 1.000000e-24 : f32
    %22 = vector.broadcast %cst_13 : f32 to vector<16x1xf32>
    %23 = arith.maximumf %21, %22 : vector<16x1xf32>
    %24 = math.rsqrt %23 : vector<16x1xf32>
    %25 = vector.broadcast %24 : vector<16x1xf32> to vector<16x128xf32>
    %26 = arith.mulf %18, %25 : vector<16x128xf32>
    %27 = arith.truncf %26 : vector<16x128xf32> to vector<16x128xbf16>
    %c0_14 = arith.constant 0 : index
    %c0_15 = arith.constant 0 : index
    %28 = vector.load %arg6[%c0_14, %c0_15] : memref<16x128xbf16, #tpu.memory_space<vmem>>, vector<16x128xbf16>
    tpu.vector_store %arg6[%c0_14, %c0_15], %27 {strides = array<i32>} : memref<16x128xbf16, #tpu.memory_space<vmem>>, vector<16x128xbf16>,
    return
  }
  func.func @transform_0(%arg0: i32) -> (i32, i32) {
    %c0_i32 = arith.constant 0 : i32
    %c0_i32_0 = arith.constant 0 : i32
    return %arg0, %c0_i32 : i32, i32
  }
  func.func @transform_1(%arg0: i32) -> (i32, i32) {
    %c0_i32 = arith.constant 0 : i32
    %c0_i32_0 = arith.constant 0 : i32
    return %arg0, %c0_i32 : i32, i32
  }
  func.func @transform_2(%arg0: i32) -> (i32, i32) {
    %c0_i32 = arith.constant 0 : i32
    %c0_i32_0 = arith.constant 0 : i32
    %c0_i32_1 = arith.constant 0 : i32
    return %c0_i32, %c0_i32_0 : i32, i32
  }
  func.func @transform_3(%arg0: i32) -> (i32, i32) {
    %c0_i32 = arith.constant 0 : i32
    %c0_i32_0 = arith.constant 0 : i32
    %c0_i32_1 = arith.constant 0 : i32
    return %c0_i32, %c0_i32_0 : i32, i32
  }
  func.func @transform_4(%arg0: i32) -> (i32, i32) {
    %c0_i32 = arith.constant 0 : i32
    %c0_i32_0 = arith.constant 0 : i32
    %c0_i32_1 = arith.constant 0 : i32
    return %c0_i32, %c0_i32_0 : i32, i32
  }
  func.func @transform_5(%arg0: i32) -> (i32, i32) {
    %c0_i32 = arith.constant 0 : i32
    %c0_i32_0 = arith.constant 0 : i32
    return %arg0, %c0_i32 : i32, i32
  }
}

</mosaic_0001>

<bundles_post_ra>
// kernel: tpu_custom_call.1
= control target key start
LH: loop header
LB: loop body
LE: loop exit
PB: predicated region body
PF: predicated region fallthrough
CT: control target
= control target key end

     0   :  { %10 = vsyncpa [#allocation3], 0  ;;  %s1066_s0 = inlined_call_operand.vmem [shape: bf16[32,32], index: 0, kind: input, shape index: {}]   ;;  %s1067_s1 = inlined_call_operand.vmem [shape: f32[32,1], index: 1, kind: input, shape index: {}]   ;;  %s1068_s2 = inlined_call_operand.vmem [shape: bf16[32,128], index: 2, kind: input, shape index: {}]   ;;  %s1069_s3 = inlined_call_operand.hbm [shape: f32[256,128], index: 3, kind: input, shape index: {}]   ;;  %s1070_s4 = inlined_call_operand.vmem [shape: f32[1,128], index: 4, kind: input, shape index: {}]   ;;  %s1071_s5 = inlined_call_operand.hbm [shape: bf16[32,128], index: 5, kind: output, shape index: {}]  }
   0x1   :  { %11 = vsyncpa [#allocation4], 0 }
   0x2   :  { %13 = vsyncpa [#allocation4 + $0x1], 0  ;;  %s913_s18 = smov 0   ;;  %s915_s19 = smov 0  }
   0x3   :  { %s917_s20 = smov 0   ;;  %s919_s21 = smov 0  }
   0x4 LB: > { %s934_s22 = sadd.s32 4294967295, %s872_s21   ;;  %s595_s23 = sadd.s32 4294967294, %s872_s21   ;;  %s872_s21 = sphi %s919_s21, %s1087_s21   ;;  %s868_s20 = sphi %s917_s20, %s1086_s20   ;;  %s864_s19 = sphi %s915_s19, %s1085_s19   ;;  %s860_s18 = sphi %s913_s18, %s1084_s18  }
   0x5   : > { %s938_s24 = sadd.s32 1, %s872_s21   ;;  %s141_s25 = sadd.s32 1, %s868_s20 }
   0x6   : > { %s138_s26 = ssub.s32 %s872_s21, %s938_s24  ;;  %p151_p0 = scmp.ne.s32.totalorder %s868_s20, %s864_s19 }
   0x7   : > { %p139_p1 = scmp.eq.s32.totalorder %s138_s26, 0  ;;  %p152_p2 = scmp.eq.s32.totalorder %s934_s22, 1 }
   0x8   : > { %p157_p3 = scmp.ne.s32.totalorder %s864_s19, %s860_s18  ;;  %p158_p4 = scmp.eq.s32.totalorder %s595_s23, 1 }
   0x9   : > { %s949_s27 = scalar_select %p139_p1, %s868_s20, %s141_s25  }
   0xa   : > { %p951_p5 = por %p152_p2, %p151_p0  ;;  %p955_p6 = por %p158_p4, %p157_p3 }
   0xb   : > { %p596_p7 = scmp.ge.s32.totalorder %s872_s21, 1  ;;  %p165_p8 = scmp.lt.s32.totalorder %s872_s21, 3 }
   0xc   : > { %s1075_s28 = scalar_select %p951_p5, 1, 0 }
   0xd   : > { %s1076_s29 = scalar_select %p955_p6, 1, 0 }
   0xe   : > { %p1072_p9 = scmp.eq.s32.totalorder %s934_s22, 0  ;;  %p962_p10 = pnand %p596_p7, %p165_p8 }
   0xf   : > { %s874_s6 = smov [#allocation2]   ;;  %s778_s11 = scalar_lea.hbm %s1069_s3, 4096 }
  0x10   : > { %s1077_s30 = scalar_select %p962_p10, 1, 0 }
  0x11   : > { %s180_s7 = sshll.u32 %s874_s6, 4  ;;  %p719_p11 = pneg %p962_p10  ;;  %s181_s7 = int_to_ptr.vmem [resolvable:$true] %s180_s7 }
  0x12   : > { %p779_p13 = scmp.ne.s32.totalorder %s1069_s3, %s778_s11  ;;  %p785_p3 = scmp.lt.u32.totalorder %s778_s11, %s1069_s3 }
  0x13   : > { %p970_p12 = pnand %p1072_p9, %p719_p11 }
  0x15   : > { %p780_p0 = pneg %p970_p12 }
  0x17   : > { %p781_p1 = pnand %p780_p0, %p779_p13 }
  0x19   : > { %p782_p2 = pneg %p781_p1 }
  0x1b   : > { %p787_p4 = pnand %p785_p3, %p782_p2 }
  0x1d   : > { %790 = shalt.err (!%p787_p4)
}
  0x1e   : > { %s791_s16 = scalar_lea.vmem %s181_s7, 4096  ;;  %p799_p9 = scmp.lt.s32.totalorder %s181_s7, %s181_s7 }
  0x1f   : > { %p792_p7 = scmp.ne.s32.totalorder %s181_s7, %s791_s16  ;;  %p800_p6 = scmp.lt.s32.totalorder %s791_s16, %s791_s16 }
  0x21   : > { %p794_p8 = pnand %p792_p7, %p780_p0  ;;  %p801_p5 = por %p800_p6, %p799_p9 }
  0x23   : > { %p795_p11 = pneg %p794_p8 }
  0x25   : > { %p802_p10 = pnand %p801_p5, %p795_p11 }
  0x27   : > { %805 = shalt.err (!%p802_p10)
}
  0x28   : > { %s875_s17 = smov 128   ;;  %s876_s23 = smov 8  }
  0x29   : > { %722 = dma.hbm_to_vmem [thread:$0]  (!%p970_p12), %s1069_s3, 4096, %s181_s7, [#allocation3], %s875_s17, %s875_s17, %s876_s23  }
  0x2a   : > { %p1079_p13 = scmp.ne.s32.totalorder %s1077_s30, 0 }
  0x2b   : > { %p1080_p1 = scmp.eq.s32.totalorder (!%p1079_p13), %s934_s22, 0 }
  0x2c   : > { %217 = sbr.rel (%p1079_p13) target bundleno = 675 (0x2a3), region = 40 }
  0x33   : > { %851 = dma.done.wait (%p1080_p1), [#allocation3], 4096   ;;  %p1081_p0 = pmov %p1080_p1 }
  0x34   : > { %s602_s6 = sshll.u32 %s934_s22, 1  ;;  %v877_v0 = vmov 0.0   ;;  %vm878_vm0 = vmmov 0   ;;  %v879_v1 = vmov 0   ;;  %v771_v2 = vld [vmem:[%s1068_s2] sm:$0xff]   ;;  %v772_v3 = vld [vmem:[%s1068_s2 + $0x8] sm:$0xff]  }
  0x35   : > { %853 = vsyncadd (%p1081_p0), [#allocation3], 4294963200  ;;  %673 = vmatprep.subr.bf16.mxu0 %v877_v0  ;;  %677 = vmatprep.mubr.msk.bf16.mxu0 %vm878_vm0, %v877_v0  ;;  %p251_p5 = scmp.lt.s32.totalorder %s602_s6, 3  ;;  %v371_v7 = vld [vmem:[#allocation2 + $0x80] sm:$0xff]  ;;  %v372_v8 = vld [vmem:[#allocation2 + $0x88] sm:$0xff]  ;;  %vm288_vm1 = vcmask 261120  }
  0x36   : > { %770 = vset.pattern.permute.xlu0 %v879_v1  ;;  %674 = vmatpush3.bf16.msra.mxu0 %v771_v2  ;;  %v355_v9 = vld [vmem:[#allocation2] sm:$0xff]  ;;  %v356_v10 = vld [vmem:[#allocation2 + $0x8] sm:$0xff]  ;;  %v681_v11 = vpack.c.bf16 %v372_v8, %v371_v7  ;;  %v373_v13 = vld [vmem:[#allocation2 + $0x90] sm:$0xff]  ;;  %s606_s23 = sshll.u32 %s934_s22, 4  ;;  %s247_s10 = sand.u32 1, %s864_s19  }
  0x37   : > { %s1089_s6 = smov (!%p251_p5, %s602_s6), 3  ;;  %675 = vmatprep.subr.bf16.mxu0 %v877_v0  ;;  %v683_v12 = vpack.c.bf16 %v356_v10, %v355_v9  ;;  %v374_v14 = vld [vmem:[#allocation2 + $0x98] sm:$0xff]  ;;  %v357_v15 = vld [vmem:[#allocation2 + $0x10] sm:$0xff]  ;;  %v375_v18 = vld [vmem:[#allocation2 + $0xa0] sm:$0xff]  ;;  %s347_s25 = sshra.s32 %s606_s23, 3 }
  0x38   : > { %s603_s7 = sshll.u32 %s1089_s6, 2  ;;  %s605_s8 = sshll.u32 %s1089_s6, 3  ;;  %v685_v16 = vpack.c.bf16 %v374_v14, %v373_v13  ;;  %v358_v17 = vld [vmem:[#allocation2 + $0x18] sm:$0xff]  ;;  %v376_v19 = vld [vmem:[#allocation2 + $0xa8] sm:$0xff]  ;;  %682 = vmatprep.subr.bf16.mxu1 %v681_v11  ;;  %v359_v22 = vld [vmem:[#allocation2 + $0x20] sm:$0xff] }
  0x39   : > { %s254_s12 = scalar_lea.vmem %s1066_s0, %s603_s7  ;;  %s260_s15 = scalar_lea.vmem %s1067_s1, %s605_s8  ;;  %684 = vmatpush3.bf16.msra.mxu1 %v683_v12  ;;  %v687_v20 = vpack.c.bf16 %v358_v17, %v357_v15  ;;  %v689_v21 = vpack.c.bf16 %v376_v19, %v375_v18  ;;  %v360_v23 = vld [vmem:[#allocation2 + $0x28] sm:$0xff]  ;;  %v377_v24 = vld [vmem:[#allocation2 + $0xb0] sm:$0xff]  ;;  %v378_v25 = vld [vmem:[#allocation2 + $0xb8] sm:$0xff] }
  0x3a   : > { %v773_v4 = vld [vmem:[%s254_s12] sm:$0xff]   ;;  %v334_v6 = vld [vmem:[%s260_s15 + $0x8] sm:$0xff]  ;;  %676 = vmatpush3.bf16.msra.mxu0 %v772_v3  ;;  %686 = vmatprep.subr.bf16.mxu1 %v685_v16  ;;  %v691_v26 = vpack.c.bf16 %v360_v23, %v359_v22  ;;  %v693_v27 = vpack.c.bf16 %v378_v25, %v377_v24  ;;  %v361_v28 = vld [vmem:[#allocation2 + $0x30] sm:$0xff]  ;;  %s611_s26 = sshll.u32 %s347_s25, 2  ;;  %s601_s11 = sshll.u32 %s247_s10, 3 }
  0x3b   : > { %v333_v5 = vld [vmem:[%s260_s15] sm:$0xff]  ;;  %v362_v29 = vld [vmem:[#allocation2 + $0x38] sm:$0xff]  ;;  %v380_v31 = vld [vmem:[#allocation2 + $0xc8] sm:$0xff]  ;;  %s350_s8 = scalar_lea.vmem %s1068_s2, %s611_s26  ;;  %s622_s12 = sshll.u32 %s934_s22, 7 }
  0x3c   : > { %337 = vperm.xlu0 %770, %v333_v5   ;;  %v379_v30 = vld [vmem:[#allocation2 + $0xc0] sm:$0xff]  ;;  %v695_v32 = vpack.c.bf16 %v362_v29, %v361_v28  ;;  %v364_v35 = vld [vmem:[#allocation2 + $0x48] sm:$0xff]  ;;  %v381_v36 = vld [vmem:[#allocation2 + $0xd0] sm:$0xff]  ;;  %s249_s13 = scalar_lea.vmem [#allocation5], %s601_s11  ;;  %s1021_s17 = scalar_lea.hbm %s1071_s5, %s622_s12 }
  0x3d   : > { %678 = vmatmul.mubr.msk.bf16.vlgmr.msra.gmra.mrb[0].mxu0 %vm288_vm1, %v773_v4  ;;  %688 = vmatpush3.bf16.msra.mxu1 %v687_v20  ;;  %v697_v33 = vpack.c.bf16 %v380_v31, %v379_v30  ;;  %v363_v34 = vld [vmem:[#allocation2 + $0x40] sm:$0xff]  ;;  %v382_v37 = vld [vmem:[#allocation2 + $0xd8] sm:$0xff]  ;;  %v365_v40 = vld [vmem:[#allocation2 + $0x50] sm:$0xff]  ;;  %s507_s14 = sshll.u32 %s249_s13, 4  ;;  %s1025_s23 = scalar_lea.sflag [#allocation4], %s247_s10  ;;  %s1023_s14 = int_to_ptr.vmem [resolvable:$true] %s507_s14 }
  0x3e   : > { %690 = vmatprep.subr.bf16.mxu1 %v689_v21  ;;  %v699_v38 = vpack.c.bf16 %v364_v35, %v363_v34  ;;  %v701_v39 = vpack.c.bf16 %v382_v37, %v381_v36  ;;  %v366_v41 = vld [vmem:[#allocation2 + $0x58] sm:$0xff]  ;;  %v383_v42 = vld [vmem:[#allocation2 + $0xe0] sm:$0xff]  ;;  %v384_v43 = vld [vmem:[#allocation2 + $0xe8] sm:$0xff]  ;;  %s806_s22 = scalar_lea.vmem %s1023_s14, 128  ;;  %p1082_p9 = scmp.ne.s32.totalorder %s1075_s28, 0 }
  0x3f   : > { %v703_v44 = vpack.c.bf16 %v366_v41, %v365_v40  ;;  %v705_v45 = vpack.c.bf16 %v384_v43, %v383_v42  ;;  %v367_v46 = vld [vmem:[#allocation2 + $0x60] sm:$0xff]  ;;  %v368_v47 = vld [vmem:[#allocation2 + $0x68] sm:$0xff]  ;;  %v385_v48 = vld [vmem:[#allocation2 + $0xf0] sm:$0xff]  ;;  %p807_p6 = scmp.ne.s32.totalorder %s1023_s14, %s806_s22  ;;  %s880_s25 = smov [#allocation5]  }
  0x40   : > { %342 = vperm.xlu0 %770, %v334_v6   ;;  %v386_v49 = vld [vmem:[#allocation2 + $0xf8] sm:$0xff]  ;;  %v707_v50 = vpack.c.bf16 %v368_v47, %v367_v46  ;;  %v369_v52 = vld [vmem:[#allocation2 + $0x70] sm:$0xff]  ;;  %v624_v56 = vld [vmem:[%s350_s8] sm:$0xff]   ;;  %s810_s26 = sshll.u32 %s880_s25, 4  ;;  %s811_s26 = int_to_ptr.vmem [resolvable:$false] %s810_s26 }
  0x41   : > { %692 = vmatpush3.bf16.msra.mxu1 %v691_v26  ;;  %v709_v51 = vpack.c.bf16 %v386_v49, %v385_v48  ;;  %v370_v53 = vld [vmem:[#allocation2 + $0x78] sm:$0xff]  ;;  %v625_v58 = vunpack.c.l.bf16 %v624_v56  ;;  %v626_v1 = vunpack.c.h.bf16 %v624_v56  ;;  %v612_v4 = vld [vmem:[%s1070_s4] ss:$0 sm:$0xff]  ;;  %p808_p10 = pnand %p807_p6, %p1082_p9  ;;  %s812_s6 = scalar_lea.vmem %s811_s26, 256 }
  0x42   : > { %694 = vmatprep.subr.bf16.mxu1 %v693_v27  ;;  %v711_v54 = vpack.c.bf16 %v370_v53, %v369_v52  ;;  %p813_p2 = scmp.lt.s32.totalorder %s1023_s14, %s811_s26  ;;  %p814_p3 = scmp.lt.s32.totalorder %s812_s6, %s806_s22 }
  0x43   : > { %p809_p12 = pneg %p808_p10 }
  0x44   : > { %p815_p4 = por %p814_p3, %p813_p2 }
  0x45   : > { %696 = vmatpush3.bf16.msra.mxu1 %v695_v32 }
  0x46   : > { %698 = vmatprep.subr.bf16.mxu1 %v697_v33  ;;  %p816_p7 = pnand %p815_p4, %p809_p12 }
  0x49   : > { %700 = vmatpush3.bf16.msra.mxu1 %v699_v38 }
  0x4a   : > { %702 = vmatprep.subr.bf16.mxu1 %v701_v39 }
  0x4d   : > { %704 = vmatpush3.bf16.msra.mxu1 %v703_v44 }
  0x4e   : > { %706 = vmatprep.subr.bf16.mxu1 %v705_v45 }
  0x51   : > { %708 = vmatpush3.bf16.msra.mxu1 %v707_v50 }
  0x52   : > { %710 = vmatprep.subr.bf16.mxu1 %v709_v51 }
  0x55   : > { %712 = vmatpush3.bf16.msra.mxu1 %v711_v54 }
  0xbb   : > { %v338_v55 = vpop.permute.xlu0 %337 }
  0xbf   : > { %v343_v61 = vpop.permute.xlu0 %342 }
 0x110   : > { %v326_v57 = vpop.f32.mrb[0].mxu0 }
 0x111   : > { %v679_v59 = vpop.f32.mrb[1].mxu0  ;;  %v345_v60 = vmul.f32 %v338_v55, %v326_v57 }
 0x112   : > { %v329_v62 = vpop.f32.mrb[2].mxu0 }
 0x113   : > { %v346_v63 = vmul.f32 %v343_v61, %v329_v62  ;;  %v680_v0 = vpop.f32.mrb[3].mxu0  ;;  %458 = vmatprep.mubr.f32.mxu1 %v345_v60 }
 0x114   : > { %459 = vmatmul.mubr.f32.vlgmr.msra.gmra.mrb[0].mxu1 %v625_v58 }
 0x115   : > { %463 = vmatprep.mubr.f32.mxu1 %v346_v63 }
 0x118   : > { %464 = vmatmul.mubr.f32.gmra.mrb[2].mxu1 %v626_v1 }
 0x1e7   : > { %v667_v2 = vpop.f32.mrb[0].mxu1 }
 0x1e8   : > { %v668_v3 = vpop.f32.mrb[1].mxu1 }
 0x1e9   : > { %v669_v5 = vadd.f32 %v668_v3, %v667_v2 }
 0x1eb   : > { %v670_v6 = vpop.f32.mrb[2].mxu1  ;;  %v461_v7 = vadd.f32 %v669_v5, %v612_v4 }
 0x1ec   : > { %v671_v8 = vpop.f32.mrb[3].mxu1 }
 0x1ed   : > { %v672_v9 = vadd.f32 %v671_v8, %v670_v6  ;;  %v469_v10 = vmax.f32 %v461_v7, 0.0 }
 0x1ef   : > { %v466_v11 = vadd.f32 %v672_v9, %v612_v4  ;;  %v471_v12 = vmul.f32 %v469_v10, %v469_v10 }
 0x1f1   : > { %v470_v13 = vmax.f32 %v466_v11, 0.0  ;;  %473 = vadd.xlane.f32.xlu1 %v471_v12 }
 0x1f3   : > { %v472_v14 = vmul.f32 %v470_v13, %v470_v13 }
 0x1f5   : > { %475 = vadd.xlane.f32.xlu1 %v472_v14 }
 0x27e   : > { %v474_v15 = vpop.xlane.xlu1 %473 }
 0x27f   : > { %v477_v16 = vmax.f32 %v474_v15, 1e-24 }
 0x281   : > { %774 = vrsqrt.f32 %v477_v16 }
 0x282   : > { %v476_v17 = vpop.xlane.xlu1 %475 }
 0x283   : > { %v478_v18 = vmax.f32 %v476_v17, 1e-24 }
 0x285   : > { %776 = vrsqrt.f32 %v478_v18 }
 0x28b   : > { %v775_v19 = vpop.eup %774 }
 0x28c   : > { %v481_v21 = vmul.f32 %v775_v19, %v469_v10 }
 0x28f   : > { %v777_v20 = vpop.eup %776 }
 0x290   : > { %v482_v22 = vmul.f32 %v777_v20, %v470_v13 }
 0x292   : > { %v630_v23 = vpack.c.bf16 %v482_v22, %v481_v21 }
 0x294   : > { %631 = vst [vmem:[%s249_s13] sm:$0xff] %v630_v23  }
 0x295   : > { %819 = shalt.err (!%p816_p7)
}
 0x296   : > { %s820_s7 = scalar_lea.hbm %s1021_s17, 128  ;;  %s824_s9 = scalar_lea.hbm %s1071_s5, 256 }
 0x297   : > { %p821_p8 = scmp.ne.s32.totalorder %s1021_s17, %s820_s7  ;;  %p825_p1 = scmp.lt.u32.totalorder %s1021_s17, %s1071_s5 }
 0x298   : > { %p826_p0 = scmp.lt.u32.totalorder %s824_s9, %s820_s7  ;;  %p828_p6 = scmp.lt.u32.totalorder %s820_s7, %s1021_s17 }
 0x299   : > { %p822_p11 = pnand %p821_p8, %p1082_p9 }
 0x29a   : > { %p827_p5 = por %p826_p0, %p825_p1 }
 0x29b   : > { %p823_p13 = pneg %p822_p11 }
 0x29c   : > { %p829_p10 = por %p828_p6, %p827_p5 }
 0x29e   : > { %p830_p12 = pnand %p829_p10, %p823_p13 }
 0x2a0   : > { %833 = shalt.err (!%p830_p12)
}
 0x2a1   : > { %s881_s12 = smov 64   ;;  %s882_s13 = smov 4  }
 0x2a2   : > { %717 = dma.vmem_to_hbm [thread:$0]  (%p1082_p9), %s1023_s14, 128, %s1021_s17, %s1025_s23, %s881_s12, %s881_s12, %s882_s13  }
 0x2a3 PF: > { %p729_p2 = scmp.ge.s32.totalorder %s872_s21, 2  ;;  %s522_s15 = sand.u32 1, %s860_s18  }
 0x2a4   : > { %p1083_p3 = scmp.ne.s32.totalorder %s1076_s29, 0  ;;  %s523_s16 = scalar_lea.sflag [#allocation4], %s522_s15 }
 0x2a6   : > { %p724_p4 = pnand %p729_p2, %p1083_p3 }
 0x2a8   : > { %855 = dma.done.wait (!%p724_p4), %s523_s16, 128  }
 0x2a9   : > { %857 = vsyncadd (!%p724_p4), %s523_s16, 4294967168  ;;  %p16_p7 = scmp.ge.s32.totalorder %s938_s24, 4   ;;  %s1084_s18 = smov %s864_s19 }
 0x2aa   : > { %s1085_s19 = smov %s868_s20  ;;  %s1086_s20 = smov %s949_s27 }
 0x2ab   : > { %s1087_s21 = smov %s938_s24  ;;  %18 = sbr.rel (!%p16_p7) target bundleno = 4 (0x4), region = 84 }
 0x2b2   :  { %528 = vsyncpa [#allocation3], 1 }
 0x2b3   :  { %530 = vsyncpa [#allocation3 + $0x1], 1 }
 0x2b4   :  { %531 = vsyncpa [#allocation4], 1 }
 0x2b5   :  { %533 = vsyncpa [#allocation4 + $0x1], 1 }

</bundles_post_ra>
